<compile_context>
chip_gen: v7x
topology: tpu7x:2x2x1
jax: 0.10.0
libtpu: 0.0.40
codegen_flags: <defaults>
</compile_context>

<pallas_src>
import jax
import jax.numpy as jnp
from jax import lax
from jax.experimental import pallas as pl
from jax.experimental.pallas import tpu as pltpu

# ----------------------------- hyperparameters -----------------------------
NUM_CLASSES = 3
C_EEG = 4              # input_size[0]  (EEG channels)
T_LEN = 128            # input_size[1]  (time samples)
SAMPLING_RATE = 32
NUM_T = 4
NUM_S = 4
HIDDEN = 32
DROPOUT_RATE = 0.5     # identity in inference mode
BN_EPS = 1e-5
B = 2

_INCEPTION_WINDOW = [0.5, 0.25, 0.125]
T_KERNELS = [int(w * SAMPLING_RATE) for w in _INCEPTION_WINDOW]   # [16, 8, 4]
T_POOL = 16
S_POOL = 8
T_OUTS = [T_LEN - k + 1 for k in T_KERNELS]       # [113, 121, 125]
L_BRANCH = [t // T_POOL for t in T_OUTS]          # [7, 7, 7]
L_TOT = sum(L_BRANCH)                             # 21
L_P = L_TOT // S_POOL                             # 2
FEAT = NUM_S * 3 * L_P                            # 24
T_USED = [l * T_POOL for l in L_BRANCH]           # [112, 112, 112]
BR_PAD = 128                                      # lane-aligned per-(f,branch) block
CPF = 3 * BR_PAD                                  # padded conv cols per filter = 384
CONV_COLS = NUM_T * CPF                           # 1536
N_S_ROWS = 3 * NUM_S                              # 12 real Sception rows
ROWS_PB = 16                                      # padded Sception rows per batch item
ROWS_BD = B * ROWS_PB                             # 32


# ------------------------- fused TSception kernel ---------------------------
def _tsception_kernel(x_ref, wbig_ref, bias_ref, weff_ref, beff_ref,
                      p16_ref, p8_ref, w1_ref, b1_ref, w2_ref, b2_ref, o_ref):
    # --- Tception: all branches/filters/batch items as one bf16 MXU matmul --
    # x: (B*C_EEG, T) = (8, 128) bf16; W_big: (128, 1536) bf16 banded Toeplitz
    # (columns lane-padded to 128 per (filter, branch) block).
    conv = jnp.dot(x_ref[...], wbig_ref[...], preferred_element_type=jnp.float32)
    conv = jnp.maximum(conv + bias_ref[...], 0.0)          # (8, 1536), stays in vregs

    # --- Sception contraction (BN_t folded), block-diagonal over batch ------
    # weff[f]: (32, 8) = blockdiag over batch of the padded (16, 4) weight;
    # slices below are at multiples of 128 lanes -> whole-vreg selects.
    z = jnp.dot(weff_ref[0], conv[:, 0:CPF], preferred_element_type=jnp.float32)
    for f in range(1, NUM_T):
        z = z + jnp.dot(weff_ref[f], conv[:, f * CPF:(f + 1) * CPF],
                        preferred_element_type=jnp.float32)          # (32, 384)

    # AvgPool(1,16) (linear, commuted past the contraction) as a matmul.
    pre = jnp.dot(z, p16_ref[...], preferred_element_type=jnp.float32) \
        + beff_ref[...]                                               # (32, 21)
    s = jnp.maximum(pre, 0.0)                                         # Sception ReLU
    sp = jnp.dot(s, p8_ref[...], preferred_element_type=jnp.float32)  # (32, L_P)

    # --- fc1 (BN_s folded) + ReLU (+ Dropout = id), batched over B ----------
    # feature q = r*L_P + p  ->  h[:, b] = b1' + sum_p W1p' @ sp[b_rows, p]
    h = b1_ref[...]                                                   # (32, 1)
    for pidx in range(L_P):
        spp = jnp.concatenate(
            [sp[b * ROWS_PB:(b + 1) * ROWS_PB, pidx:pidx + 1] for b in range(B)],
            axis=1)                                                   # (16, B)
        h = h + jnp.dot(w1_ref[pidx], spp, preferred_element_type=jnp.float32)
    h = jnp.maximum(h, 0.0)                                           # (32, B)

    # --- fc2 + LogSoftmax, single (3, B) store ------------------------------
    logits = jnp.dot(w2_ref[...], h, preferred_element_type=jnp.float32) \
        + b2_ref[...]                                                 # (3, B)
    m = jnp.max(logits, axis=0, keepdims=True)
    lse = m + jnp.log(jnp.sum(jnp.exp(logits - m), axis=0, keepdims=True))
    o_ref[...] = logits - lse                                         # LogSoftmax(dim=1)


@jax.jit
def tsception_forward(x_nchw, params):
    # Batch folded into the sublane axis; bf16 input for the bf16 MXU path.
    x2d = x_nchw[:, 0].reshape(B * C_EEG, T_LEN).astype(jnp.bfloat16)
    out_cb = pl.pallas_call(
        _tsception_kernel,
        out_shape=jax.ShapeDtypeStruct((NUM_CLASSES, B), jnp.float32),
        in_specs=[pl.BlockSpec(memory_space=pltpu.MemorySpace.VMEM)] * 11,
        out_specs=pl.BlockSpec(memory_space=pltpu.MemorySpace.VMEM),
    )(x2d,
      params['W_big'], params['bias_row'],
      params['W_eff_bd'], params['b_eff_bd'],
      params['P16'], params['P8'],
      params['W1eff'], params['b1eff_col'],
      params['W2'], params['b2_col'])
    return out_cb.T                                   # (B, NUM_CLASSES)


# ------------------------------ parameters ----------------------------------
def init_params(key):
    ks = jax.random.split(key, 22)
    p = {}
    p['wt'] = [0.1 * jax.random.normal(ks[i], (NUM_T, k), jnp.float32)
               for i, k in enumerate(T_KERNELS)]
    p['bt'] = [0.1 * jax.random.normal(ks[3 + i], (NUM_T,), jnp.float32)
               for i in range(3)]
    p['ws1'] = 0.1 * jax.random.normal(ks[6], (NUM_S, NUM_T, C_EEG), jnp.float32)
    p['bs1'] = 0.1 * jax.random.normal(ks[7], (NUM_S,), jnp.float32)
    p['ws2'] = 0.1 * jax.random.normal(ks[8], (NUM_S, NUM_T, C_EEG // 2), jnp.float32)
    p['bs2'] = 0.1 * jax.random.normal(ks[9], (NUM_S,), jnp.float32)
    p['gamma_t'] = 1.0 + 0.1 * jax.random.normal(ks[10], (NUM_T,), jnp.float32)
    p['beta_t'] = 0.1 * jax.random.normal(ks[11], (NUM_T,), jnp.float32)
    p['mean_t'] = 0.1 * jax.random.normal(ks[12], (NUM_T,), jnp.float32)
    p['var_t'] = 1.0 + 0.1 * jnp.abs(jax.random.normal(ks[13], (NUM_T,), jnp.float32))
    p['gamma_s'] = 1.0 + 0.1 * jax.random.normal(ks[14], (NUM_S,), jnp.float32)
    p['beta_s'] = 0.1 * jax.random.normal(ks[15], (NUM_S,), jnp.float32)
    p['mean_s'] = 0.1 * jax.random.normal(ks[16], (NUM_S,), jnp.float32)
    p['var_s'] = 1.0 + 0.1 * jnp.abs(jax.random.normal(ks[17], (NUM_S,), jnp.float32))
    p['W1'] = 0.1 * jax.random.normal(ks[18], (HIDDEN, FEAT), jnp.float32)
    p['b1'] = 0.1 * jax.random.normal(ks[19], (HIDDEN,), jnp.float32)
    p['W2'] = 0.1 * jax.random.normal(ks[20], (NUM_CLASSES, HIDDEN), jnp.float32)
    p['b2'] = 0.1 * jax.random.normal(ks[21], (NUM_CLASSES,), jnp.float32)

    # ------------- derived, kernel-friendly parameters (host side) ----------
    # Banded/Toeplitz temporal-conv weight, each (filter, branch) block padded
    # to BR_PAD=128 columns with zeros (lane alignment).  Only the first
    # L_BRANCH*16 conv outputs per (f, branch) are kept (the rest are dropped
    # by AvgPool's floor truncation anyway).
    def _toeplitz_cols(wrow, k, t_used):
        i = jnp.arange(T_LEN)[:, None]
        t = jnp.arange(t_used)[None, :]
        d = i - t
        valid = (d >= 0) & (d < k)
        blk = jnp.where(valid, wrow[jnp.clip(d, 0, k - 1)], 0.0)   # (T_LEN, t_used)
        return jnp.pad(blk, ((0, 0), (0, BR_PAD - t_used)))        # (T_LEN, 128)

    p['W_big'] = jnp.concatenate(
        [_toeplitz_cols(p['wt'][br][f], T_KERNELS[br], T_USED[br])
         for f in range(NUM_T) for br in range(3)], axis=1
    ).astype(jnp.bfloat16)                                           # (128, 1536) bf16
    p['bias_row'] = jnp.concatenate(
        [jnp.pad(jnp.broadcast_to(p['bt'][br][f], (T_USED[br],)),
                 (0, BR_PAD - T_USED[br]))
         for f in range(NUM_T) for br in range(3)]).reshape(1, CONV_COLS)

    # AvgPool(1,16) as a matmul over one filter's padded (branch, t) columns.
    rows = []
    off = 0
    for br in range(3):
        col_ids = off + jnp.arange(T_USED[br]) // T_POOL
        blk = (col_ids[:, None] == jnp.arange(L_TOT)[None, :]
               ).astype(jnp.float32) / T_POOL
        rows.append(jnp.pad(blk, ((0, BR_PAD - T_USED[br]), (0, 0))))
        off += L_BRANCH[br]
    p['P16'] = jnp.concatenate(rows, axis=0)                         # (384, 21)
    # AvgPool(1,8) as a matmul (cols >= 16 are floor-dropped -> all-zero rows).
    j = jnp.arange(L_TOT)
    p['P8'] = ((j[:, None] // S_POOL) == jnp.arange(L_P)[None, :]
               ).astype(jnp.float32) / S_POOL                        # (21, 2)

    sc_t = p['gamma_t'] / jnp.sqrt(p['var_t'] + BN_EPS)
    sh_t = p['beta_t'] - p['mean_t'] * sc_t
    sc_s = p['gamma_s'] / jnp.sqrt(p['var_s'] + BN_EPS)
    sh_s = p['beta_s'] - p['mean_s'] * sc_s

    # Combined Sception weight: row r = s*3 + h (h=0 -> Sception1,
    # h=1/2 -> Sception2 stride-2 halves), col = f*C_EEG + c.
    zeros_half = jnp.zeros((NUM_S, NUM_T, C_EEG // 2), jnp.float32)
    w1_rows = p['ws1'].reshape(NUM_S, NUM_T * C_EEG)
    w2_h0 = jnp.concatenate([p['ws2'], zeros_half], axis=2).reshape(NUM_S, NUM_T * C_EEG)
    w2_h1 = jnp.concatenate([zeros_half, p['ws2']], axis=2).reshape(NUM_S, NUM_T * C_EEG)
    W_comb = jnp.stack([w1_rows, w2_h0, w2_h1], axis=1).reshape(N_S_ROWS, NUM_T * C_EEG)
    b_comb = jnp.stack([p['bs1'], p['bs2'], p['bs2']], axis=1).reshape(N_S_ROWS)
    W_comb3 = W_comb.reshape(N_S_ROWS, NUM_T, C_EEG)

    # Fold BN_t (affine between the two ReLUs) into the Sception weights/bias,
    # pad rows 12->16 per batch item, and build the block-diagonal-over-batch
    # version so one matmul per filter covers both batch items.
    W_eff = jnp.transpose(W_comb3 * sc_t[None, :, None], (1, 0, 2))   # (NUM_T,12,4)
    W_eff_pad = jnp.pad(W_eff, ((0, 0), (0, ROWS_PB - N_S_ROWS), (0, 0)))  # (NUM_T,16,4)
    bd_rows = []
    for b in range(B):
        blocks = [jnp.zeros_like(W_eff_pad)] * B
        blocks[b] = W_eff_pad
        bd_rows.append(jnp.concatenate(blocks, axis=2))
    p['W_eff_bd'] = jnp.concatenate(bd_rows, axis=1)                  # (NUM_T, 32, 8)
    b_eff = b_comb + (W_comb3 * sh_t[None, :, None]).sum(axis=(1, 2))
    b_eff_pad = jnp.pad(b_eff, (0, ROWS_PB - N_S_ROWS))
    p['b_eff_bd'] = jnp.tile(b_eff_pad, B).reshape(ROWS_BD, 1)        # (32, 1)

    # fc1 pre-split by pooled-column index (feature q = r*L_P + p), with BN_s
    # (exact affine between the two ReLUs) folded in, columns padded 12->16.
    sc_s_row = jnp.repeat(sc_s, 3)                                    # (12,)
    sh_s_row = jnp.repeat(sh_s, 3)
    W1p = [p['W1'][:, pidx::L_P] for pidx in range(L_P)]              # each (32, 12)
    p['W1eff'] = jnp.stack(
        [jnp.pad(W1p[pidx] * sc_s_row[None, :],
                 ((0, 0), (0, ROWS_PB - N_S_ROWS))) for pidx in range(L_P)],
        axis=0)                                                       # (L_P, 32, 16)
    b1eff = p['b1'] + sum(W1p[pidx] @ sh_s_row for pidx in range(L_P))
    p['b1eff_col'] = b1eff.reshape(HIDDEN, 1)
    p['b2_col'] = p['b2'].reshape(NUM_CLASSES, 1)
    return p


# --------------------------- pure-JAX reference -----------------------------
def reference_forward(x_nchw, p):
    prec = lax.Precision.HIGHEST
    dn = ('NCHW', 'OIHW', 'NCHW')
    outs = []
    for w, b, k in zip(p['wt'], p['bt'], T_KERNELS):
        rhs = w.reshape(NUM_T, 1, 1, k)
        conv = lax.conv_general_dilated(x_nchw, rhs, (1, 1), 'VALID',
                                        dimension_numbers=dn, precision=prec)
        conv = jnp.maximum(conv + b.reshape(1, NUM_T, 1, 1), 0.0)
        t_out = conv.shape[-1]
        l = t_out // T_POOL
        outs.append(conv[..., :l * T_POOL]
                    .reshape(B, NUM_T, C_EEG, l, T_POOL).mean(-1))
    out = jnp.concatenate(outs, axis=-1)
    sc_t = p['gamma_t'] / jnp.sqrt(p['var_t'] + BN_EPS)
    sh_t = p['beta_t'] - p['mean_t'] * sc_t
    out = out * sc_t.reshape(1, NUM_T, 1, 1) + sh_t.reshape(1, NUM_T, 1, 1)

    rhs1 = p['ws1'].reshape(NUM_S, NUM_T, C_EEG, 1)
    z1 = lax.conv_general_dilated(out, rhs1, (1, 1), 'VALID',
                                  dimension_numbers=dn, precision=prec)
    z1 = jnp.maximum(z1 + p['bs1'].reshape(1, NUM_S, 1, 1), 0.0)
    z1 = z1[..., :L_P * S_POOL].reshape(B, NUM_S, 1, L_P, S_POOL).mean(-1)

    rhs2 = p['ws2'].reshape(NUM_S, NUM_T, C_EEG // 2, 1)
    z2 = lax.conv_general_dilated(out, rhs2, (C_EEG // 2, 1), 'VALID',
                                  dimension_numbers=dn, precision=prec)
    z2 = jnp.maximum(z2 + p['bs2'].reshape(1, NUM_S, 1, 1), 0.0)
    z2 = z2[..., :L_P * S_POOL].reshape(B, NUM_S, 2, L_P, S_POOL).mean(-1)

    out_final = jnp.concatenate([z1, z2], axis=2)
    sc_s = p['gamma_s'] / jnp.sqrt(p['var_s'] + BN_EPS)
    sh_s = p['beta_s'] - p['mean_s'] * sc_s
    out_final = out_final * sc_s.reshape(1, NUM_S, 1, 1) + sh_s.reshape(1, NUM_S, 1, 1)

    flat = out_final.reshape(B, -1)
    h = jnp.maximum(jnp.dot(flat, p['W1'].T, precision=prec) + p['b1'], 0.0)
    logits = jnp.dot(h, p['W2'].T, precision=prec) + p['b2']
    return jax.nn.log_softmax(logits, axis=-1)


# --------------------------------- main --------------------------------------
if __name__ == "__main__":
    key = jax.random.PRNGKey(0)
    kx, kp = jax.random.split(key)
    x = jax.random.normal(kx, (B, 1, C_EEG, T_LEN), jnp.float32)
    params = init_params(kp)

    out = jax.block_until_ready(tsception_forward(x, params))
    assert out.shape == (B, NUM_CLASSES), out.shape

    ref = reference_forward(x, params)
    max_diff = float(jnp.max(jnp.abs(out - ref)))
    if not bool(jnp.allclose(out, ref, rtol=2e-2, atol=2e-2)):
        raise AssertionError(
            f"Pallas output mismatch vs reference (max|diff|={max_diff}):\n"
            f"{out}\nvs\n{ref}")
    print("KERNEL_OK")
</pallas_src>

<mosaic_0001>
module attributes {stable_mosaic.version = 11 : i64} {
  func.func @_tsception_kernel(%arg0: memref<8x128xbf16, #tpu.memory_space<vmem>>, %arg1: memref<128x1536xbf16, #tpu.memory_space<vmem>>, %arg2: memref<1x1536xf32, #tpu.memory_space<vmem>>, %arg3: memref<4x32x8xf32, #tpu.memory_space<vmem>>, %arg4: memref<32x1xf32, #tpu.memory_space<vmem>>, %arg5: memref<384x21xf32, #tpu.memory_space<vmem>>, %arg6: memref<21x2xf32, #tpu.memory_space<vmem>>, %arg7: memref<2x32x16xf32, #tpu.memory_space<vmem>>, %arg8: memref<32x1xf32, #tpu.memory_space<vmem>>, %arg9: memref<3x32xf32, #tpu.memory_space<vmem>>, %arg10: memref<3x1xf32, #tpu.memory_space<vmem>>, %arg11: memref<3x2xf32, #tpu.memory_space<vmem>>) attributes {dimension_semantics = [], scalar_prefetch = 0 : i64, scratch_operands = 0 : i64, tpu.core_type = #tpu.core_type<tc>} {
    %c0 = arith.constant 0 : index
    %c0_0 = arith.constant 0 : index
    %0 = vector.load %arg0[%c0, %c0_0] : memref<8x128xbf16, #tpu.memory_space<vmem>>, vector<8x128xbf16>
    %c0_1 = arith.constant 0 : index
    %c0_2 = arith.constant 0 : index
    %1 = vector.load %arg1[%c0_1, %c0_2] : memref<128x1536xbf16, #tpu.memory_space<vmem>>, vector<128x1536xbf16>
    %cst = arith.constant dense<0.000000e+00> : vector<8x1536xf32>
    %2 = tpu.matmul %0, %1, %cst {dimension_numbers = #tpu.dot_dimension_numbers<[1], [0], [0], [1], [0, 0, 1, 1], [], []>} : vector<8x128xbf16>, vector<128x1536xbf16>, vector<8x1536xf32> -> vector<8x1536xf32>
    %c0_3 = arith.constant 0 : index
    %c0_4 = arith.constant 0 : index
    %3 = vector.load %arg2[%c0_3, %c0_4] : memref<1x1536xf32, #tpu.memory_space<vmem>>, vector<1x1536xf32>
    %4 = vector.broadcast %3 : vector<1x1536xf32> to vector<8x1536xf32>
    %5 = arith.addf %2, %4 : vector<8x1536xf32>
    %cst_5 = arith.constant 0.000000e+00 : f32
    %6 = vector.broadcast %cst_5 : f32 to vector<8x1536xf32>
    %7 = arith.maximumf %5, %6 : vector<8x1536xf32>
    %c0_6 = arith.constant 0 : index
    %c0_7 = arith.constant 0 : index
    %c0_8 = arith.constant 0 : index
    %8 = vector.load %arg3[%c0_6, %c0_7, %c0_8] : memref<4x32x8xf32, #tpu.memory_space<vmem>>, vector<1x32x8xf32>
    %9 = vector.shape_cast %8 : vector<1x32x8xf32> to vector<32x8xf32>
    %10 = vector.extract_strided_slice %7 {offsets = [0, 0], sizes = [8, 384], strides = [1, 1]} : vector<8x1536xf32> to vector<8x384xf32>
    %cst_9 = arith.constant dense<0.000000e+00> : vector<32x384xf32>
    %11 = tpu.matmul %9, %10, %cst_9 {dimension_numbers = #tpu.dot_dimension_numbers<[1], [0], [0], [1], [0, 0, 1, 1], [], []>} : vector<32x8xf32>, vector<8x384xf32>, vector<32x384xf32> -> vector<32x384xf32>
    %c1 = arith.constant 1 : index
    %c0_10 = arith.constant 0 : index
    %c0_11 = arith.constant 0 : index
    %12 = vector.load %arg3[%c1, %c0_10, %c0_11] : memref<4x32x8xf32, #tpu.memory_space<vmem>>, vector<1x32x8xf32>
    %13 = vector.shape_cast %12 : vector<1x32x8xf32> to vector<32x8xf32>
    %14 = vector.extract_strided_slice %7 {offsets = [0, 384], sizes = [8, 384], strides = [1, 1]} : vector<8x1536xf32> to vector<8x384xf32>
    %cst_12 = arith.constant dense<0.000000e+00> : vector<32x384xf32>
    %15 = tpu.matmul %13, %14, %cst_12 {dimension_numbers = #tpu.dot_dimension_numbers<[1], [0], [0], [1], [0, 0, 1, 1], [], []>} : vector<32x8xf32>, vector<8x384xf32>, vector<32x384xf32> -> vector<32x384xf32>
    %16 = arith.addf %11, %15 : vector<32x384xf32>
    %c2 = arith.constant 2 : index
    %c0_13 = arith.constant 0 : index
    %c0_14 = arith.constant 0 : index
    %17 = vector.load %arg3[%c2, %c0_13, %c0_14] : memref<4x32x8xf32, #tpu.memory_space<vmem>>, vector<1x32x8xf32>
    %18 = vector.shape_cast %17 : vector<1x32x8xf32> to vector<32x8xf32>
    %19 = vector.extract_strided_slice %7 {offsets = [0, 768], sizes = [8, 384], strides = [1, 1]} : vector<8x1536xf32> to vector<8x384xf32>
    %cst_15 = arith.constant dense<0.000000e+00> : vector<32x384xf32>
    %20 = tpu.matmul %18, %19, %cst_15 {dimension_numbers = #tpu.dot_dimension_numbers<[1], [0], [0], [1], [0, 0, 1, 1], [], []>} : vector<32x8xf32>, vector<8x384xf32>, vector<32x384xf32> -> vector<32x384xf32>
    %21 = arith.addf %16, %20 : vector<32x384xf32>
    %c3 = arith.constant 3 : index
    %c0_16 = arith.constant 0 : index
    %c0_17 = arith.constant 0 : index
    %22 = vector.load %arg3[%c3, %c0_16, %c0_17] : memref<4x32x8xf32, #tpu.memory_space<vmem>>, vector<1x32x8xf32>
    %23 = vector.shape_cast %22 : vector<1x32x8xf32> to vector<32x8xf32>
    %24 = vector.extract_strided_slice %7 {offsets = [0, 1152], sizes = [8, 384], strides = [1, 1]} : vector<8x1536xf32> to vector<8x384xf32>
    %cst_18 = arith.constant dense<0.000000e+00> : vector<32x384xf32>
    %25 = tpu.matmul %23, %24, %cst_18 {dimension_numbers = #tpu.dot_dimension_numbers<[1], [0], [0], [1], [0, 0, 1, 1], [], []>} : vector<32x8xf32>, vector<8x384xf32>, vector<32x384xf32> -> vector<32x384xf32>
    %26 = arith.addf %21, %25 : vector<32x384xf32>
    %c0_19 = arith.constant 0 : index
    %c0_20 = arith.constant 0 : index
    %27 = vector.load %arg5[%c0_19, %c0_20] : memref<384x21xf32, #tpu.memory_space<vmem>>, vector<384x21xf32>
    %cst_21 = arith.constant dense<0.000000e+00> : vector<32x21xf32>
    %28 = tpu.matmul %26, %27, %cst_21 {dimension_numbers = #tpu.dot_dimension_numbers<[1], [0], [0], [1], [0, 0, 1, 1], [], []>} : vector<32x384xf32>, vector<384x21xf32>, vector<32x21xf32> -> vector<32x21xf32>
    %c0_22 = arith.constant 0 : index
    %c0_23 = arith.constant 0 : index
    %29 = vector.load %arg4[%c0_22, %c0_23] : memref<32x1xf32, #tpu.memory_space<vmem>>, vector<32x1xf32>
    %30 = vector.broadcast %29 : vector<32x1xf32> to vector<32x21xf32>
    %31 = arith.addf %28, %30 : vector<32x21xf32>
    %cst_24 = arith.constant 0.000000e+00 : f32
    %32 = vector.broadcast %cst_24 : f32 to vector<32x21xf32>
    %33 = arith.maximumf %31, %32 : vector<32x21xf32>
    %c0_25 = arith.constant 0 : index
    %c0_26 = arith.constant 0 : index
    %34 = vector.load %arg6[%c0_25, %c0_26] : memref<21x2xf32, #tpu.memory_space<vmem>>, vector<21x2xf32>
    %cst_27 = arith.constant dense<0.000000e+00> : vector<32x2xf32>
    %35 = tpu.matmul %33, %34, %cst_27 {dimension_numbers = #tpu.dot_dimension_numbers<[1], [0], [0], [1], [0, 0, 1, 1], [], []>} : vector<32x21xf32>, vector<21x2xf32>, vector<32x2xf32> -> vector<32x2xf32>
    %c0_28 = arith.constant 0 : index
    %c0_29 = arith.constant 0 : index
    %36 = vector.load %arg8[%c0_28, %c0_29] : memref<32x1xf32, #tpu.memory_space<vmem>>, vector<32x1xf32>
    %37 = vector.extract_strided_slice %35 {offsets = [0, 0], sizes = [16, 1], strides = [1, 1]} : vector<32x2xf32> to vector<16x1xf32>
    %38 = vector.extract_strided_slice %35 {offsets = [16, 0], sizes = [16, 1], strides = [1, 1]} : vector<32x2xf32> to vector<16x1xf32>
    %39 = tpu.concatenate %37, %38 in 1 : vector<16x1xf32>, vector<16x1xf32> -> vector<16x2xf32>
    %c0_30 = arith.constant 0 : index
    %c0_31 = arith.constant 0 : index
    %c0_32 = arith.constant 0 : index
    %40 = vector.load %arg7[%c0_30, %c0_31, %c0_32] : memref<2x32x16xf32, #tpu.memory_space<vmem>>, vector<1x32x16xf32>
    %41 = vector.shape_cast %40 : vector<1x32x16xf32> to vector<32x16xf32>
    %cst_33 = arith.constant dense<0.000000e+00> : vector<32x2xf32>
    %42 = tpu.matmul %41, %39, %cst_33 {dimension_numbers = #tpu.dot_dimension_numbers<[1], [0], [0], [1], [0, 0, 1, 1], [], []>} : vector<32x16xf32>, vector<16x2xf32>, vector<32x2xf32> -> vector<32x2xf32>
    %43 = vector.broadcast %36 : vector<32x1xf32> to vector<32x2xf32>
    %44 = arith.addf %43, %42 : vector<32x2xf32>
    %45 = vector.extract_strided_slice %35 {offsets = [0, 1], sizes = [16, 1], strides = [1, 1]} : vector<32x2xf32> to vector<16x1xf32>
    %46 = vector.extract_strided_slice %35 {offsets = [16, 1], sizes = [16, 1], strides = [1, 1]} : vector<32x2xf32> to vector<16x1xf32>
    %47 = tpu.concatenate %45, %46 in 1 : vector<16x1xf32>, vector<16x1xf32> -> vector<16x2xf32>
    %c1_34 = arith.constant 1 : index
    %c0_35 = arith.constant 0 : index
    %c0_36 = arith.constant 0 : index
    %48 = vector.load %arg7[%c1_34, %c0_35, %c0_36] : memref<2x32x16xf32, #tpu.memory_space<vmem>>, vector<1x32x16xf32>
    %49 = vector.shape_cast %48 : vector<1x32x16xf32> to vector<32x16xf32>
    %cst_37 = arith.constant dense<0.000000e+00> : vector<32x2xf32>
    %50 = tpu.matmul %49, %47, %cst_37 {dimension_numbers = #tpu.dot_dimension_numbers<[1], [0], [0], [1], [0, 0, 1, 1], [], []>} : vector<32x16xf32>, vector<16x2xf32>, vector<32x2xf32> -> vector<32x2xf32>
    %51 = arith.addf %44, %50 : vector<32x2xf32>
    %cst_38 = arith.constant 0.000000e+00 : f32
    %52 = vector.broadcast %cst_38 : f32 to vector<32x2xf32>
    %53 = arith.maximumf %51, %52 : vector<32x2xf32>
    %c0_39 = arith.constant 0 : index
    %c0_40 = arith.constant 0 : index
    %54 = vector.load %arg9[%c0_39, %c0_40] : memref<3x32xf32, #tpu.memory_space<vmem>>, vector<3x32xf32>
    %cst_41 = arith.constant dense<0.000000e+00> : vector<3x2xf32>
    %55 = tpu.matmul %54, %53, %cst_41 {dimension_numbers = #tpu.dot_dimension_numbers<[1], [0], [0], [1], [0, 0, 1, 1], [], []>} : vector<3x32xf32>, vector<32x2xf32>, vector<3x2xf32> -> vector<3x2xf32>
    %c0_42 = arith.constant 0 : index
    %c0_43 = arith.constant 0 : index
    %56 = vector.load %arg10[%c0_42, %c0_43] : memref<3x1xf32, #tpu.memory_space<vmem>>, vector<3x1xf32>
    %57 = vector.broadcast %56 : vector<3x1xf32> to vector<3x2xf32>
    %58 = arith.addf %55, %57 : vector<3x2xf32>
    %cst_44 = arith.constant dense<0xFF800000> : vector<2xf32>
    %59 = vector.multi_reduction <maximumf>, %58, %cst_44 [0] : vector<3x2xf32> to vector<2xf32>
    %60 = vector.shape_cast %59 : vector<2xf32> to vector<1x2xf32>
    %61 = vector.broadcast %60 : vector<1x2xf32> to vector<3x2xf32>
    %62 = arith.subf %58, %61 : vector<3x2xf32>
    %63 = math.exp %62 : vector<3x2xf32>
    %cst_45 = arith.constant dense<0.000000e+00> : vector<2xf32>
    %64 = vector.multi_reduction <add>, %63, %cst_45 [0] : vector<3x2xf32> to vector<2xf32>
    %65 = vector.shape_cast %64 : vector<2xf32> to vector<1x2xf32>
    %66 = math.log %65 : vector<1x2xf32>
    %67 = arith.addf %60, %66 : vector<1x2xf32>
    %68 = vector.broadcast %67 : vector<1x2xf32> to vector<3x2xf32>
    %69 = arith.subf %58, %68 : vector<3x2xf32>
    %c0_46 = arith.constant 0 : index
    %c0_47 = arith.constant 0 : index
    %70 = vector.load %arg11[%c0_46, %c0_47] : memref<3x2xf32, #tpu.memory_space<vmem>>, vector<3x2xf32>
    tpu.vector_store %arg11[%c0_46, %c0_47], %69 {strides = array<i32>} : memref<3x2xf32, #tpu.memory_space<vmem>>, vector<3x2xf32>,
    return
  }
}

</mosaic_0001>

<bundles_post_ra>
// kernel: tsception_forward.1
= control target key start
LH: loop header
LB: loop body
LE: loop exit
PB: predicated region body
PF: predicated region fallthrough
CT: control target
= control target key end

     0   :  { %v3117_v1 = vmov 0   ;;  %vm947_vm0 = vcmask 64512   ;;  %vm1988_vm1 = vcmask 1044480   ;;  %vm1975_vm2 = vcmask 171008   ;;  %s3120_s27 = smov 1   ;;  %s3848_s1 = inlined_call_operand.vmem [shape: bf16[128,1536], index: 1, kind: input, shape index: {}]   ;;  %s3849_s0 = inlined_call_operand.vmem [shape: bf16[8,128], index: 0, kind: input, shape index: {}]   ;;  %s3850_s3 = inlined_call_operand.vmem [shape: f32[4,32,8], index: 3, kind: input, shape index: {}]   ;;  %s3851_s2 = inlined_call_operand.vmem [shape: f32[1,1536], index: 2, kind: input, shape index: {}]   ;;  %s3852_s5 = inlined_call_operand.vmem [shape: f32[384,21], index: 5, kind: input, shape index: {}]   ;;  %s3853_s4 = inlined_call_operand.vmem [shape: f32[32,1], index: 4, kind: input, shape index: {}]   ;;  %s3854_s6 = inlined_call_operand.vmem [shape: f32[21,2], index: 6, kind: input, shape index: {}]   ;;  %s3855_s8 = inlined_call_operand.vmem [shape: f32[32,1], index: 8, kind: input, shape index: {}]   ;;  %s3856_s7 = inlined_call_operand.vmem [shape: f32[2,32,16], index: 7, kind: input, shape index: {}]   ;;  %s3857_s10 = inlined_call_operand.vmem [shape: f32[3,1], index: 10, kind: input, shape index: {}]   ;;  %s3858_s9 = inlined_call_operand.vmem [shape: f32[3,32], index: 9, kind: input, shape index: {}]   ;;  %s3859_s11 = inlined_call_operand.vmem [shape: f32[3,2], index: 11, kind: output, shape index: {}]  }
   0x1   :  { %v2969_v0 = vld [vmem:[%s3848_s1 + $0x4] ss:$48 sps:$4 sm:$0xff]   ;;  %712 = vmatprep.mubr.bf16.mxu0 %v3117_v1  ;;  %753 = vmatprep.mubr.bf16.mxu1 %v3117_v1  ;;  %v2971_v2 = vld [vmem:[%s3848_s1] ss:$48 sps:$4 sm:$0xff]   ;;  %v2975_v5 = vld [vmem:[%s3848_s1 + $0xc] ss:$48 sps:$4 sm:$0xff]  }
   0x2   :  { %2957 = vset.pattern.permute.xlu0 %v3117_v1  ;;  %2958 = vset.pattern.permute.xlu1 %v3117_v1  ;;  %v2972_v3 = vld [vmem:[%s3848_s1 + $0x64] ss:$48 sps:$4 sm:$0xff]   ;;  %v2974_v4 = vld [vmem:[%s3848_s1 + $0x60] ss:$48 sps:$4 sm:$0xff]   ;;  %v2977_v6 = vld [vmem:[%s3848_s1 + $0x8] ss:$48 sps:$4 sm:$0xff]  }
   0x3   :  { %680 = vmatprep.subr.bf16.mxu0 %v2969_v0  ;;  %v2978_v7 = vld [vmem:[%s3848_s1 + $0xc4] ss:$48 sps:$4 sm:$0xff]   ;;  %721 = vmatprep.subr.bf16.mxu1 %v2975_v5  ;;  %v2981_v8 = vld [vmem:[%s3848_s1 + $0x6c] ss:$48 sps:$4 sm:$0xff]   ;;  %v2983_v9 = vld [vmem:[%s3848_s1 + $0x68] ss:$48 sps:$4 sm:$0xff]  }
   0x4   :  { %681 = vmatpush1.bf16.msra.mxu0 %v2971_v2  ;;  %722 = vmatpush1.bf16.msra.mxu1 %v2977_v6  ;;  %v2980_v10 = vld [vmem:[%s3848_s1 + $0xc0] ss:$48 sps:$4 sm:$0xff]   ;;  %v2984_v11 = vld [vmem:[%s3848_s1 + $0x124] ss:$48 sps:$4 sm:$0xff]   ;;  %v2987_v12 = vld [vmem:[%s3848_s1 + $0xcc] ss:$48 sps:$4 sm:$0xff]  }
   0x5   :  { %682 = vmatprep.subr.bf16.mxu0 %v2972_v3  ;;  %723 = vmatprep.subr.bf16.mxu1 %v2981_v8  ;;  %v2989_v13 = vld [vmem:[%s3848_s1 + $0xc8] ss:$48 sps:$4 sm:$0xff]   ;;  %v2986_v14 = vld [vmem:[%s3848_s1 + $0x120] ss:$48 sps:$4 sm:$0xff]   ;;  %v2993_v15 = vld [vmem:[%s3848_s1 + $0x12c] ss:$48 sps:$4 sm:$0xff]  }
   0x6   :  { %v2990_v16 = vld [vmem:[%s3848_s1 + $0x184] ss:$48 sps:$4 sm:$0xff]   ;;  %v2995_v17 = vld [vmem:[%s3848_s1 + $0x128] ss:$48 sps:$4 sm:$0xff]   ;;  %v2992_v18 = vld [vmem:[%s3848_s1 + $0x180] ss:$48 sps:$4 sm:$0xff]  }
   0x7   :  { %v2999_v19 = vld [vmem:[%s3848_s1 + $0x18c] ss:$48 sps:$4 sm:$0xff]   ;;  %v2996_v20 = vld [vmem:[%s3848_s1 + $0x1e4] ss:$48 sps:$4 sm:$0xff]   ;;  %v3001_v21 = vld [vmem:[%s3848_s1 + $0x188] ss:$48 sps:$4 sm:$0xff]  }
   0x8   :  { %683 = vmatpush1.bf16.msra.mxu0 %v2974_v4  ;;  %724 = vmatpush1.bf16.msra.mxu1 %v2983_v9  ;;  %v2998_v22 = vld [vmem:[%s3848_s1 + $0x1e0] ss:$48 sps:$4 sm:$0xff]   ;;  %v3005_v23 = vld [vmem:[%s3848_s1 + $0x1ec] ss:$48 sps:$4 sm:$0xff]   ;;  %v3002_v24 = vld [vmem:[%s3848_s1 + $0x244] ss:$48 sps:$4 sm:$0xff]  }
   0x9   :  { %684 = vmatprep.subr.bf16.mxu0 %v2978_v7  ;;  %725 = vmatprep.subr.bf16.mxu1 %v2987_v12  ;;  %v3004_v25 = vld [vmem:[%s3848_s1 + $0x240] ss:$48 sps:$4 sm:$0xff]   ;;  %v3007_v26 = vld [vmem:[%s3848_s1 + $0x1e8] ss:$48 sps:$4 sm:$0xff]   ;;  %v3011_v27 = vld [vmem:[%s3848_s1 + $0x24c] ss:$48 sps:$4 sm:$0xff]  }
   0xa   :  { %v3008_v28 = vld [vmem:[%s3848_s1 + $0x2a4] ss:$48 sps:$4 sm:$0xff]   ;;  %v3010_v29 = vld [vmem:[%s3848_s1 + $0x2a0] ss:$48 sps:$4 sm:$0xff]   ;;  %v3013_v30 = vld [vmem:[%s3848_s1 + $0x248] ss:$48 sps:$4 sm:$0xff]  }
   0xb   :  { %v3017_v31 = vld [vmem:[%s3848_s1 + $0x2ac] ss:$48 sps:$4 sm:$0xff]   ;;  %v3016_v32 = vld [vmem:[%s3848_s1 + $0x14] ss:$48 sps:$4 sm:$0xff]   ;;  %v3286_v33 = vld [vmem:[%s3849_s0] sm:$0xf] }
   0xc   :  { %685 = vmatpush1.bf16.msra.mxu0 %v2980_v10  ;;  %726 = vmatpush1.bf16.msra.mxu1 %v2989_v13  ;;  %v3014_v34 = vld [vmem:[%s3848_s1 + $0x10] ss:$48 sps:$4 sm:$0xff]   ;;  %v3019_v35 = vld [vmem:[%s3848_s1 + $0x2a8] ss:$48 sps:$4 sm:$0xff]   ;;  %v3025_v36 = vld [vmem:[%s3848_s1 + $0x1c] ss:$48 sps:$4 sm:$0xff]  }
   0xd   :  { %686 = vmatprep.subr.bf16.mxu0 %v2984_v11  ;;  %727 = vmatprep.subr.bf16.mxu1 %v2993_v15  ;;  %v3022_v37 = vld [vmem:[%s3848_s1 + $0x74] ss:$48 sps:$4 sm:$0xff]   ;;  %v3020_v38 = vld [vmem:[%s3848_s1 + $0x70] ss:$48 sps:$4 sm:$0xff]   ;;  %v3023_v39 = vld [vmem:[%s3848_s1 + $0x18] ss:$48 sps:$4 sm:$0xff]  }
   0xe   :  { %v3031_v40 = vld [vmem:[%s3848_s1 + $0x7c] ss:$48 sps:$4 sm:$0xff]   ;;  %v3028_v41 = vld [vmem:[%s3848_s1 + $0xd4] ss:$48 sps:$4 sm:$0xff]   ;;  %v3026_v42 = vld [vmem:[%s3848_s1 + $0xd0] ss:$48 sps:$4 sm:$0xff]  }
   0xf   :  { %v3029_v43 = vld [vmem:[%s3848_s1 + $0x78] ss:$48 sps:$4 sm:$0xff]   ;;  %v3037_v44 = vld [vmem:[%s3848_s1 + $0xdc] ss:$48 sps:$4 sm:$0xff]   ;;  %v3034_v45 = vld [vmem:[%s3848_s1 + $0x134] ss:$48 sps:$4 sm:$0xff]  }
  0x10   :  { %687 = vmatpush1.bf16.msra.mxu0 %v2986_v14  ;;  %728 = vmatpush1.bf16.msra.mxu1 %v2995_v17  ;;  %v3032_v46 = vld [vmem:[%s3848_s1 + $0x130] ss:$48 sps:$4 sm:$0xff]   ;;  %v3035_v47 = vld [vmem:[%s3848_s1 + $0xd8] ss:$48 sps:$4 sm:$0xff]   ;;  %v3043_v48 = vld [vmem:[%s3848_s1 + $0x13c] ss:$48 sps:$4 sm:$0xff]  }
  0x11   :  { %688 = vmatprep.subr.bf16.mxu0 %v2990_v16  ;;  %729 = vmatprep.subr.bf16.mxu1 %v2999_v19  ;;  %v3040_v49 = vld [vmem:[%s3848_s1 + $0x194] ss:$48 sps:$4 sm:$0xff]   ;;  %v3038_v50 = vld [vmem:[%s3848_s1 + $0x190] ss:$48 sps:$4 sm:$0xff]   ;;  %v3041_v51 = vld [vmem:[%s3848_s1 + $0x138] ss:$48 sps:$4 sm:$0xff]  }
  0x12   :  { %v3049_v52 = vld [vmem:[%s3848_s1 + $0x19c] ss:$48 sps:$4 sm:$0xff]   ;;  %v3046_v53 = vld [vmem:[%s3848_s1 + $0x1f4] ss:$48 sps:$4 sm:$0xff]   ;;  %v3044_v54 = vld [vmem:[%s3848_s1 + $0x1f0] ss:$48 sps:$4 sm:$0xff]  }
  0x13   :  { %v3047_v55 = vld [vmem:[%s3848_s1 + $0x198] ss:$48 sps:$4 sm:$0xff]   ;;  %v3055_v56 = vld [vmem:[%s3848_s1 + $0x1fc] ss:$48 sps:$4 sm:$0xff]   ;;  %v3052_v57 = vld [vmem:[%s3848_s1 + $0x254] ss:$48 sps:$4 sm:$0xff]  }
  0x14   :  { %689 = vmatpush1.bf16.msra.mxu0 %v2992_v18  ;;  %730 = vmatpush1.bf16.msra.mxu1 %v3001_v21  ;;  %v3050_v58 = vld [vmem:[%s3848_s1 + $0x250] ss:$48 sps:$4 sm:$0xff]   ;;  %v3053_v59 = vld [vmem:[%s3848_s1 + $0x1f8] ss:$48 sps:$4 sm:$0xff]   ;;  %v3061_v60 = vld [vmem:[%s3848_s1 + $0x25c] ss:$48 sps:$4 sm:$0xff]  }
  0x15   :  { %690 = vmatprep.subr.bf16.mxu0 %v2996_v20  ;;  %731 = vmatprep.subr.bf16.mxu1 %v3005_v23  ;;  %v3058_v61 = vld [vmem:[%s3848_s1 + $0x2b4] ss:$48 sps:$4 sm:$0xff]   ;;  %v3056_v62 = vld [vmem:[%s3848_s1 + $0x2b0] ss:$48 sps:$4 sm:$0xff]   ;;  %v3059_v63 = vld [vmem:[%s3848_s1 + $0x258] ss:$48 sps:$4 sm:$0xff]  }
  0x16   :  { %v3067_v0 = vld [vmem:[%s3848_s1 + $0x2bc] ss:$48 sps:$4 sm:$0xff]   ;;  %v3064_v2 = vld [vmem:[%s3848_s1 + $0x24] ss:$48 sps:$4 sm:$0xff]   ;;  %v3062_v3 = vld [vmem:[%s3848_s1 + $0x20] ss:$48 sps:$4 sm:$0xff]  }
  0x17   :  { %v3065_v4 = vld [vmem:[%s3848_s1 + $0x2b8] ss:$48 sps:$4 sm:$0xff]   ;;  %v3073_v5 = vld [vmem:[%s3848_s1 + $0x2c] ss:$48 sps:$4 sm:$0xff]   ;;  %v3070_v6 = vld [vmem:[%s3848_s1 + $0x84] ss:$48 sps:$4 sm:$0xff]  }
  0x18   :  { %691 = vmatpush1.bf16.msra.mxu0 %v2998_v22  ;;  %732 = vmatpush1.bf16.msra.mxu1 %v3007_v26  ;;  %v3071_v7 = vld [vmem:[%s3848_s1 + $0x28] ss:$48 sps:$4 sm:$0xff]   ;;  %v3068_v8 = vld [vmem:[%s3848_s1 + $0x80] ss:$48 sps:$4 sm:$0xff]   ;;  %v3079_v9 = vld [vmem:[%s3848_s1 + $0x8c] ss:$48 sps:$4 sm:$0xff]  }
  0x19   :  { %692 = vmatprep.subr.bf16.mxu0 %v3002_v24  ;;  %733 = vmatprep.subr.bf16.mxu1 %v3011_v27  ;;  %v3076_v10 = vld [vmem:[%s3848_s1 + $0xe4] ss:$48 sps:$4 sm:$0xff]   ;;  %v3077_v11 = vld [vmem:[%s3848_s1 + $0x88] ss:$48 sps:$4 sm:$0xff]   ;;  %v3074_v12 = vld [vmem:[%s3848_s1 + $0xe0] ss:$48 sps:$4 sm:$0xff]  }
  0x1a   :  { %v3085_v13 = vld [vmem:[%s3848_s1 + $0xec] ss:$48 sps:$4 sm:$0xff]   ;;  %v3082_v14 = vld [vmem:[%s3848_s1 + $0x144] ss:$48 sps:$4 sm:$0xff]   ;;  %v3080_v15 = vld [vmem:[%s3848_s1 + $0x140] ss:$48 sps:$4 sm:$0xff]  }
  0x1b   :  { %v3091_v16 = vld [vmem:[%s3848_s1 + $0x14c] ss:$48 sps:$4 sm:$0xff]   ;;  %v3088_v17 = vld [vmem:[%s3848_s1 + $0x1a4] ss:$48 sps:$4 sm:$0xff]   ;;  %v3089_v18 = vld [vmem:[%s3848_s1 + $0x148] ss:$48 sps:$4 sm:$0xff]  }
  0x1c   :  { %693 = vmatpush1.bf16.msra.mxu0 %v3004_v25  ;;  %734 = vmatpush1.bf16.msra.mxu1 %v3013_v30  ;;  %v3086_v19 = vld [vmem:[%s3848_s1 + $0x1a0] ss:$48 sps:$4 sm:$0xff]   ;;  %v3097_v20 = vld [vmem:[%s3848_s1 + $0x1ac] ss:$48 sps:$4 sm:$0xff]   ;;  %v3094_v21 = vld [vmem:[%s3848_s1 + $0x204] ss:$48 sps:$4 sm:$0xff]  }
  0x1d   :  { %694 = vmatprep.subr.bf16.mxu0 %v3008_v28  ;;  %735 = vmatprep.subr.bf16.mxu1 %v3017_v31  ;;  %v3095_v22 = vld [vmem:[%s3848_s1 + $0x1a8] ss:$48 sps:$4 sm:$0xff]   ;;  %v3092_v23 = vld [vmem:[%s3848_s1 + $0x200] ss:$48 sps:$4 sm:$0xff]   ;;  %v3103_v24 = vld [vmem:[%s3848_s1 + $0x20c] ss:$48 sps:$4 sm:$0xff]  }
  0x1e   :  { %v3100_v25 = vld [vmem:[%s3848_s1 + $0x264] ss:$48 sps:$4 sm:$0xff]   ;;  %v3101_v26 = vld [vmem:[%s3848_s1 + $0x208] ss:$48 sps:$4 sm:$0xff]   ;;  %v3098_v27 = vld [vmem:[%s3848_s1 + $0x260] ss:$48 sps:$4 sm:$0xff]  }
  0x1f   :  { %v3109_v28 = vld [vmem:[%s3848_s1 + $0x26c] ss:$48 sps:$4 sm:$0xff]   ;;  %v3107_v30 = vld [vmem:[%s3848_s1 + $0x268] ss:$48 sps:$4 sm:$0xff]   ;;  %v3104_v31 = vld [vmem:[%s3848_s1 + $0x2c0] ss:$48 sps:$4 sm:$0xff]  }
  0x20   :  { %695 = vmatpush1.bf16.msra.mxu0 %v3010_v29  ;;  %736 = vmatpush1.bf16.msra.mxu1 %v3019_v35  ;;  %v3106_v29 = vld [vmem:[%s3848_s1 + $0x2c4] ss:$48 sps:$4 sm:$0xff]   ;;  %v3118_v35 = vmov 0.0   ;;  %vm2096_vm3 = vcmask 130048   ;;  %vm2089_vm4 = vcmask 7168   ;;  %vm3122_vm5 = vmmov 0  }
  0x21   :  { %762 = vmatprep.subr.bf16.mxu0 %v3016_v32  ;;  %803 = vmatprep.subr.bf16.mxu1 %v3025_v36  ;;  %v3112_v32 = vld [vmem:[%s3848_s1 + $0x2cc] ss:$48 sps:$4 sm:$0xff]   ;;  %v2542_v36 = vld [vmem:[%s3850_s3 + $0x20] sm:$0xff]  ;;  %vm2345_vm6 = vcmask 261120   ;;  %vm2419_vm7 = vcmask 10240  }
  0x23   :  { %713 = vmatmul.mubr.bf16.vlgmr.msra.gmra.mrb[0].mxu0 %v3286_v33  ;;  %754 = vmatmul.mubr.bf16.vlgmr.msra.gmra.mrb[0].mxu1 %v3286_v33 }
  0x24   :  { %763 = vmatpush1.bf16.msra.mxu0 %v3014_v34  ;;  %794 = vmatprep.mubr.bf16.mxu0 %v3117_v1  ;;  %v3110_v34 = vld [vmem:[%s3848_s1 + $0x2c8] ss:$48 sps:$4 sm:$0xff]  }
  0x25   :  { %764 = vmatprep.subr.bf16.mxu0 %v3022_v37  ;;  %804 = vmatpush1.bf16.msra.mxu1 %v3023_v39 }
  0x26   :  { %835 = vmatprep.mubr.bf16.mxu1 %v3117_v1  ;;  %805 = vmatprep.subr.bf16.mxu1 %v3031_v40 }
  0x28   :  { %765 = vmatpush1.bf16.msra.mxu0 %v3020_v38 }
  0x29   :  { %766 = vmatprep.subr.bf16.mxu0 %v3028_v41  ;;  %806 = vmatpush1.bf16.msra.mxu1 %v3029_v43 }
  0x2a   :  { %807 = vmatprep.subr.bf16.mxu1 %v3037_v44 }
  0x2c   :  { %767 = vmatpush1.bf16.msra.mxu0 %v3026_v42 }
  0x2d   :  { %768 = vmatprep.subr.bf16.mxu0 %v3034_v45  ;;  %808 = vmatpush1.bf16.msra.mxu1 %v3035_v47  ;;  %v140_v45 = vlaneseq }
  0x2e   :  { %809 = vmatprep.subr.bf16.mxu1 %v3043_v48 }
  0x30   :  { %769 = vmatpush1.bf16.msra.mxu0 %v3032_v46 }
  0x31   :  { %770 = vmatprep.subr.bf16.mxu0 %v3040_v49  ;;  %810 = vmatpush1.bf16.msra.mxu1 %v3041_v51  ;;  %v136_v51 = vld [vmem:[%s3851_s2] sm:$0xff] }
  0x32   :  { %811 = vmatprep.subr.bf16.mxu1 %v3049_v52 }
  0x34   :  { %771 = vmatpush1.bf16.msra.mxu0 %v3038_v50 }
  0x35   :  { %772 = vmatprep.subr.bf16.mxu0 %v3046_v53  ;;  %812 = vmatpush1.bf16.msra.mxu1 %v3047_v55 }
  0x36   :  { %813 = vmatprep.subr.bf16.mxu1 %v3055_v56 }
  0x38   :  { %773 = vmatpush1.bf16.msra.mxu0 %v3044_v54 }
  0x39   :  { %774 = vmatprep.subr.bf16.mxu0 %v3052_v57  ;;  %814 = vmatpush1.bf16.msra.mxu1 %v3053_v59 }
  0x3a   :  { %815 = vmatprep.subr.bf16.mxu1 %v3061_v60 }
  0x3c   :  { %775 = vmatpush1.bf16.msra.mxu0 %v3050_v58 }
  0x3d   :  { %776 = vmatprep.subr.bf16.mxu0 %v3058_v61  ;;  %816 = vmatpush1.bf16.msra.mxu1 %v3059_v63 }
  0x3e   :  { %817 = vmatprep.subr.bf16.mxu1 %v3067_v0 }
  0x40   :  { %777 = vmatpush1.bf16.msra.mxu0 %v3056_v62 }
  0x41   :  { %844 = vmatprep.subr.bf16.mxu0 %v3064_v2  ;;  %818 = vmatpush1.bf16.msra.mxu1 %v3065_v4 }
  0x42   :  { %885 = vmatprep.subr.bf16.mxu1 %v3073_v5 }
  0x43   :  { %795 = vmatmul.mubr.bf16.vlgmr.msra.gmra.mrb[4].mxu0 %v3286_v33 }
  0x44   :  { %845 = vmatpush1.bf16.msra.mxu0 %v3062_v3  ;;  %876 = vmatprep.mubr.bf16.mxu0 %v3117_v1 }
  0x45   :  { %846 = vmatprep.subr.bf16.mxu0 %v3070_v6  ;;  %836 = vmatmul.mubr.bf16.vlgmr.msra.gmra.mrb[4].mxu1 %v3286_v33 }
  0x46   :  { %886 = vmatpush1.bf16.msra.mxu1 %v3071_v7  ;;  %917 = vmatprep.mubr.bf16.mxu1 %v3117_v1  ;;  %v3083_v1 = vld [vmem:[%s3848_s1 + $0xe8] ss:$48 sps:$4 sm:$0xff]  }
  0x47   :  { %887 = vmatprep.subr.bf16.mxu1 %v3079_v9 }
  0x48   :  { %847 = vmatpush1.bf16.msra.mxu0 %v3068_v8 }
  0x49   :  { %848 = vmatprep.subr.bf16.mxu0 %v3076_v10 }
  0x4a   :  { %888 = vmatpush1.bf16.msra.mxu1 %v3077_v11 }
  0x4b   :  { %889 = vmatprep.subr.bf16.mxu1 %v3085_v13 }
  0x4c   :  { %849 = vmatpush1.bf16.msra.mxu0 %v3074_v12 }
  0x4d   :  { %850 = vmatprep.subr.bf16.mxu0 %v3082_v14 }
  0x4e   :  { %890 = vmatpush1.bf16.msra.mxu1 %v3083_v1 }
  0x4f   :  { %891 = vmatprep.subr.bf16.mxu1 %v3091_v16 }
  0x50   :  { %851 = vmatpush1.bf16.msra.mxu0 %v3080_v15 }
  0x51   :  { %852 = vmatprep.subr.bf16.mxu0 %v3088_v17  ;;  %v2543_v17 = vld [vmem:[%s3850_s3 + $0x28] sm:$0xff] }
  0x52   :  { %892 = vmatpush1.bf16.msra.mxu1 %v3089_v18 }
  0x53   :  { %893 = vmatprep.subr.bf16.mxu1 %v3097_v20 }
  0x54   :  { %853 = vmatpush1.bf16.msra.mxu0 %v3086_v19 }
  0x55   :  { %854 = vmatprep.subr.bf16.mxu0 %v3094_v21  ;;  %v2544_v21 = vld [vmem:[%s3850_s3 + $0x30] sm:$0xff] }
  0x56   :  { %894 = vmatpush1.bf16.msra.mxu1 %v3095_v22 }
  0x57   :  { %895 = vmatprep.subr.bf16.mxu1 %v3103_v24  ;;  %v938_v24 = vld [vmem:[%s3850_s3] sm:$0xff] }
  0x58   :  { %855 = vmatpush1.bf16.msra.mxu0 %v3092_v23  ;;  %v2545_v23 = vld [vmem:[%s3850_s3 + $0x38] sm:$0xff] }
  0x59   :  { %856 = vmatprep.subr.bf16.mxu0 %v3100_v25 }
  0x5a   :  { %896 = vmatpush1.bf16.msra.mxu1 %v3101_v26  ;;  %v939_v26 = vld [vmem:[%s3850_s3 + $0x8] sm:$0xff] }
  0x5b   :  { %897 = vmatprep.subr.bf16.mxu1 %v3109_v28  ;;  %v941_v28 = vld [vmem:[%s3850_s3 + $0x18] sm:$0xff] }
  0x5c   :  { %857 = vmatpush1.bf16.msra.mxu0 %v3098_v27  ;;  %v940_v27 = vld [vmem:[%s3850_s3 + $0x10] sm:$0xff] }
  0x5d   :  { %858 = vmatprep.subr.bf16.mxu0 %v3106_v29  ;;  %v2562_v29 = vld [vmem:[%s3850_s3 + $0x40] sm:$0xff] }
  0x5e   :  { %898 = vmatpush1.bf16.msra.mxu1 %v3107_v30 }
  0x5f   :  { %899 = vmatprep.subr.bf16.mxu1 %v3112_v32 }
  0x60   :  { %859 = vmatpush1.bf16.msra.mxu0 %v3104_v31  ;;  %v137_v31 = vld [vmem:[%s3851_s2 + $0x8] sm:$0xf] }
  0x62   :  { %900 = vmatpush1.bf16.msra.mxu1 %v3110_v34 }
  0x63   :  { %877 = vmatmul.mubr.bf16.vlgmr.msra.gmra.mrb[8].mxu0 %v3286_v33 }
  0x64   :  { %1024 = vmatprep.mubr.f32.mxu0 %v3118_v35 }
  0x65   :  { %918 = vmatmul.mubr.bf16.vlgmr.msra.gmra.mrb[8].mxu1 %v3286_v33  ;;  %v3495_v33 = vshrl.u32 %v140_v45, 7 }
  0x66   :  { %2714 = vmatprep.mubr.msk.f32.mxu1 %vm947_vm0, %v2542_v36 }
  0x67   :  { %v154_v46 = vsub.s32 3, %v3495_v33  ;;  %v158_v47 = vsub.s32 4, %v3495_v33  ;;  %v146_v48 = vsub.s32 1, %v3495_v33  ;;  %v150_v49 = vsub.s32 2, %v3495_v33 }
  0x68   :  { %v162_v50 = vsub.s32 5, %v3495_v33  ;;  %v142_v52 = vsub.s32 0, %v3495_v33  ;;  %v170_v55 = vsub.s32 7, %v3495_v33  ;;  %v166_v20 = vsub.s32 6, %v3495_v33  ;;  %v2564_v33 = vld [vmem:[%s3850_s3 + $0x50] sm:$0xff] }
  0x69   :  { %v155_v53 = vrot.slane %v136_v51, %v154_v46  ;;  %v159_v54 = vrot.slane %v136_v51, %v158_v47  ;;  %v147_v56 = vrot.slane %v136_v51, %v146_v48  ;;  %v151_v57 = vrot.slane %v136_v51, %v150_v49 }
  0x6a   :  { %v163_v58 = vrot.slane %v136_v51, %v162_v50  ;;  %v143_v59 = vrot.slane %v136_v51, %v142_v52  ;;  %v171_v0 = vrot.slane %v136_v51, %v170_v55  ;;  %v167_v22 = vrot.slane %v136_v51, %v166_v20  ;;  %v1759_v55 = vld [vmem:[%s3852_s5 + $0x108] sm:$0xff] }
  0x6b   :  { %v175_v32 = vrot.slane %v137_v31, %v142_v52  ;;  %v179_v34 = vrot.slane %v137_v31, %v146_v48 }
  0xf6   :  { %v714_v37 = vpop.f32.mrb[0].mxu0  ;;  %v755_v41 = vpop.f32.mrb[0].mxu1 }
  0xf7   :  { %v716_v38 = vpop.f32.mrb[1].mxu0  ;;  %v757_v42 = vpop.f32.mrb[1].mxu1  ;;  %v756_v3 = vadd.f32 %v755_v41, %v151_v57  ;;  %v715_v6 = vadd.f32 %v714_v37, %v143_v59  ;;  %v183_v37 = vrot.slane %v137_v31, %v150_v49  ;;  %v2563_v49 = vld [vmem:[%s3850_s3 + $0x48] sm:$0xff]  ;;  %v2565_v59 = vld [vmem:[%s3850_s3 + $0x58] sm:$0xff] }
  0xf8   :  { %v718_v39 = vpop.f32.mrb[2].mxu0  ;;  %v759_v43 = vpop.f32.mrb[2].mxu1  ;;  %v758_v60 = vadd.f32 %v757_v42, %v155_v53  ;;  %v717_v2 = vadd.f32 %v716_v38, %v147_v56  ;;  %v1742_v56 = vld [vmem:[%s3852_s5 + $0x80] sm:$0xff]  ;;  %v1743_v57 = vld [vmem:[%s3852_s5 + $0x88] sm:$0xff] }
  0xf9   :  { %v719_v40 = vpop.f32.mrb[3].mxu0  ;;  %v760_v44 = vpop.f32.mrb[3].mxu1  ;;  %v928_v15 = vmax.f32 %v756_v3, 0.0  ;;  %v926_v18 = vmax.f32 %v715_v6, 0.0  ;;  %v1745_v3 = vld [vmem:[%s3852_s5 + $0x98] sm:$0xff] }
  0xfa   :  { %v929_v10 = vmax.f32 %v758_v60, 0.0  ;;  %v927_v1 = vmax.f32 %v717_v2, 0.0  ;;  %v187_v40 = vrot.slane %v137_v31, %v154_v46  ;;  %v1758_v46 = vld [vmem:[%s3852_s5 + $0x100] sm:$0xff]  ;;  %v1744_v2 = vld [vmem:[%s3852_s5 + $0x90] sm:$0xff] }
  0xfb   :  { %v2574_v60 = vld [vmem:[%s3850_s3 + $0x60] sm:$0xff] }
 0x116   :  { %v796_v61 = vpop.f32.mrb[4].mxu0 }
 0x117   :  { %v797_v62 = vadd.f32 %v796_v61, %v159_v54  ;;  %v798_v63 = vpop.f32.mrb[5].mxu0  ;;  %v2857_v61 = vpack.c.bf16 %v1759_v55, %v1758_v46  ;;  %v1772_v46 = vld [vmem:[%s3852_s5 + $0x170] sm:$0xff]  ;;  %v1737_v55 = vld [vmem:[%s3852_s5 + $0x58] sm:$0xff] }
 0x118   :  { %v799_v4 = vadd.f32 %v798_v63, %v163_v58  ;;  %v800_v5 = vpop.f32.mrb[6].mxu0  ;;  %v837_v9 = vpop.f32.mrb[4].mxu1  ;;  %v1726_v63 = vld [vmem:[%s3852_s5] sm:$0xff] }
 0x119   :  { %v930_v7 = vmax.f32 %v797_v62, 0.0  ;;  %v801_v8 = vpop.f32.mrb[7].mxu0  ;;  %v839_v12 = vpop.f32.mrb[5].mxu1  ;;  %v838_v25 = vadd.f32 %v837_v9, %v167_v22  ;;  %v2825_v62 = vpack.c.bf16 %v1743_v57, %v1742_v56  ;;  %v3625_v5 = vld [vmem:[%s3850_s3 + $0x70] sm:$0xff]  ;;  %v1729_v9 = vld [vmem:[%s3852_s5 + $0x18] sm:$0xff]  ;;  %v1754_v57 = vld [vmem:[%s3852_s5 + $0xe0] sm:$0xff] }
 0x11a   :  { %v931_v11 = vmax.f32 %v799_v4, 0.0  ;;  %v840_v13 = vadd.f32 %v839_v12, %v171_v0  ;;  %v841_v14 = vpop.f32.mrb[6].mxu1  ;;  %v1727_v0 = vld [vmem:[%s3852_s5 + $0x8] sm:$0xff]  ;;  %v1728_v8 = vld [vmem:[%s3852_s5 + $0x10] sm:$0xff]  ;;  %v2577_v12 = vld [vmem:[%s3850_s3 + $0x78] sm:$0xff] }
 0x11b   :  { %960 = vmatprep.subr.mxu0 %v930_v7  ;;  %v842_v16 = vpop.f32.mrb[7].mxu1  ;;  %v932_v30 = vmax.f32 %v838_v25, 0.0  ;;  %v2575_v4 = vld [vmem:[%s3850_s3 + $0x68] sm:$0xff]  ;;  %v2827_v6 = vpack.c.bf16 %v1727_v0, %v1726_v63  ;;  %v2829_v7 = vpack.c.bf16 %v1745_v3, %v1744_v2  ;;  %v2831_v14 = vpack.c.bf16 %v1729_v9, %v1728_v8  ;;  %v1732_v25 = vld [vmem:[%s3852_s5 + $0x30] sm:$0xff]  ;;  %v1757_v0 = vld [vmem:[%s3852_s5 + $0xf8] sm:$0xff] }
 0x11c   :  { %961 = vmatpush1.msra.mxu0 %v929_v10  ;;  %2712 = vmatprep.subr.mxu1 %v931_v11  ;;  %v933_v19 = vmax.f32 %v840_v13, 0.0  ;;  %v1746_v10 = vld [vmem:[%s3852_s5 + $0xa0] sm:$0xff]  ;;  %v1760_v13 = vld [vmem:[%s3852_s5 + $0x110] sm:$0xff]  ;;  %v1775_v8 = vld [vmem:[%s3853_s4 + $0x8] sm:$0xff] }
 0x11d   :  { %2546 = vmatmul.mubr.msk.f32.vlgmr.msra.gmra.mrb[12].mxu0 %vm947_vm0, %v2542_v36  ;;  %2713 = vmatpush3.msra.mxu1 %v931_v11  ;;  %v1747_v11 = vld [vmem:[%s3852_s5 + $0xa8] sm:$0xff]  ;;  %v1730_v16 = vld [vmem:[%s3852_s5 + $0x20] sm:$0xff]  ;;  %v1756_v63 = vld [vmem:[%s3852_s5 + $0xf0] sm:$0xff] }
 0x11e   :  { %1146 = vmatprep.subr.mxu0 %v927_v1  ;;  %2720 = vmatprep.subr.mxu1 %v928_v15  ;;  %v1761_v1 = vld [vmem:[%s3852_s5 + $0x118] sm:$0xff]  ;;  %v2853_v2 = vpack.c.bf16 %v1757_v0, %v1756_v63  ;;  %v1740_v3 = vld [vmem:[%s3852_s5 + $0x70] sm:$0xff] }
 0x11f   :  { %1147 = vmatpush1.msra.mxu0 %v926_v18  ;;  %2715 = vmatmul.mubr.msk.f32.vlgmr.msra.gmra.mrb[12].mxu1 %vm947_vm0, %v2543_v17  ;;  %v1748_v18 = vld [vmem:[%s3852_s5 + $0xb0] sm:$0xff]  ;;  %v2861_v20 = vpack.c.bf16 %v1761_v1, %v1760_v13  ;;  %v1777_v9 = vld [vmem:[%s3853_s4 + $0x18] sm:$0xff] }
 0x120   :  { %2721 = vmatpush3.msra.mxu1 %v928_v15  ;;  %1030 = vmatprep.mubr.f32.mxu0 %v3118_v35  ;;  %v2833_v15 = vpack.c.bf16 %v1747_v11, %v1746_v10 }
 0x121   :  { %2547 = vmatmul.mubr.msk.f32.gmra.mrb[14].mxu0 %vm947_vm0, %v2543_v17  ;;  %1337 = vmatprep.subr.mxu0 %v933_v19  ;;  %v1731_v17 = vld [vmem:[%s3852_s5 + $0x28] sm:$0xff]  ;;  %v1749_v19 = vld [vmem:[%s3852_s5 + $0xb8] sm:$0xff] }
 0x122   :  { %1036 = vmatprep.mubr.f32.mxu0 %v3118_v35  ;;  %2717 = vmatprep.mubr.msk.f32.mxu1 %vm947_vm0, %v2544_v21  ;;  %v2835_v22 = vpack.c.bf16 %v1731_v17, %v1730_v16 }
 0x123   :  { %2718 = vmatmul.mubr.msk.f32.gmra.mrb[14].mxu1 %vm947_vm0, %v2545_v23 }
 0x124   :  { %2722 = vmatprep.mubr.msk.f32.mxu1 %vm947_vm0, %v938_v24 }
 0x125   :  { %2548 = vmatmul.mubr.msk.f32.gmra.mrb[16].mxu0 %vm947_vm0, %v2544_v21  ;;  %v1762_v21 = vld [vmem:[%s3852_s5 + $0x120] sm:$0xff] }
 0x126   :  { %1042 = vmatprep.mubr.f32.mxu0 %v3118_v35 }
 0x127   :  { %2723 = vmatmul.mubr.msk.f32.vlgmr.msra.gmra.mrb[12].mxu1 %vm947_vm0, %v939_v26 }
 0x128   :  { %2725 = vmatprep.mubr.msk.f32.mxu1 %vm947_vm0, %v940_v27 }
 0x129   :  { %2549 = vmatmul.mubr.msk.f32.gmra.mrb[18].mxu0 %vm947_vm0, %v2545_v23  ;;  %v1763_v23 = vld [vmem:[%s3852_s5 + $0x128] sm:$0xff] }
 0x12a   :  { %1210 = vmatprep.mubr.f32.mxu0 %v3118_v35 }
 0x12b   :  { %2726 = vmatmul.mubr.msk.f32.gmra.mrb[14].mxu1 %vm947_vm0, %v941_v28 }
 0x12c   :  { %2730 = vmatprep.mubr.msk.f32.mxu1 %vm947_vm0, %v2562_v29 }
 0x12d   :  { %2554 = vmatmul.mubr.msk.f32.vlgmr.msra.gmra.mrb[12].mxu0 %vm947_vm0, %v938_v24  ;;  %v2837_v24 = vpack.c.bf16 %v1749_v19, %v1748_v18 }
 0x12e   :  { %1338 = vmatpush1.msra.mxu0 %v932_v30  ;;  %1216 = vmatprep.mubr.f32.mxu0 %v3118_v35  ;;  %v1764_v30 = vld [vmem:[%s3852_s5 + $0x130] sm:$0xff] }
 0x131   :  { %2555 = vmatmul.mubr.msk.f32.gmra.mrb[14].mxu0 %vm947_vm0, %v939_v26  ;;  %v1733_v26 = vld [vmem:[%s3852_s5 + $0x38] sm:$0xff] }
 0x132   :  { %1222 = vmatprep.mubr.f32.mxu0 %v3118_v35  ;;  %v2839_v31 = vpack.c.bf16 %v1733_v26, %v1732_v25 }
 0x135   :  { %2556 = vmatmul.mubr.msk.f32.gmra.mrb[16].mxu0 %vm947_vm0, %v940_v27  ;;  %v1750_v27 = vld [vmem:[%s3852_s5 + $0xc0] sm:$0xff] }
 0x136   :  { %v878_v36 = vpop.f32.mrb[8].mxu0  ;;  %1228 = vmatprep.mubr.f32.mxu0 %v3118_v35 }
 0x137   :  { %v879_v38 = vadd.f32 %v878_v36, %v175_v32  ;;  %v880_v39 = vpop.f32.mrb[9].mxu0  ;;  %v1765_v32 = vld [vmem:[%s3852_s5 + $0x138] sm:$0xff]  ;;  %v1734_v36 = vld [vmem:[%s3852_s5 + $0x40] sm:$0xff] }
 0x138   :  { %v881_v41 = vadd.f32 %v880_v39, %v179_v34  ;;  %v882_v42 = vpop.f32.mrb[10].mxu0  ;;  %v919_v44 = vpop.f32.mrb[8].mxu1  ;;  %v1753_v39 = vld [vmem:[%s3852_s5 + $0xd8] sm:$0xff] }
 0x139   :  { %v934_v43 = vmax.f32 %v879_v38, 0.0  ;;  %2557 = vmatmul.mubr.msk.f32.gmra.mrb[18].mxu0 %vm947_vm0, %v941_v28  ;;  %v883_v45 = vpop.f32.mrb[11].mxu0  ;;  %v920_v47 = vadd.f32 %v919_v44, %v183_v37  ;;  %v921_v48 = vpop.f32.mrb[9].mxu1  ;;  %v1751_v28 = vld [vmem:[%s3852_s5 + $0xc8] sm:$0xff]  ;;  %v1752_v38 = vld [vmem:[%s3852_s5 + $0xd0] sm:$0xff]  ;;  %v1766_v42 = vld [vmem:[%s3852_s5 + $0x140] sm:$0xff] }
 0x13a   :  { %1401 = vmatprep.mubr.f32.mxu0 %v3118_v35  ;;  %v922_v50 = vadd.f32 %v921_v48, %v187_v40  ;;  %v923_v51 = vpop.f32.mrb[10].mxu1  ;;  %v935_v53 = vmax.f32 %v881_v41, 0.0  ;;  %v2841_v34 = vpack.c.bf16 %v1751_v28, %v1750_v27  ;;  %v1735_v37 = vld [vmem:[%s3852_s5 + $0x48] sm:$0xff]  ;;  %v2869_v40 = vpack.c.bf16 %v1765_v32, %v1764_v30  ;;  %v1769_v48 = vld [vmem:[%s3852_s5 + $0x158] sm:$0xff] }
 0x13b   :  { %2728 = vmatprep.subr.mxu1 %v934_v43  ;;  %v936_v52 = vmax.f32 %v920_v47, 0.0  ;;  %v924_v54 = vpop.f32.mrb[11].mxu1  ;;  %v2843_v41 = vpack.c.bf16 %v1735_v37, %v1734_v36  ;;  %v2845_v44 = vpack.c.bf16 %v1753_v39, %v1752_v38  ;;  %v1768_v47 = vld [vmem:[%s3852_s5 + $0x150] sm:$0xff]  ;;  %v1771_v51 = vld [vmem:[%s3852_s5 + $0x168] sm:$0xff] }
 0x13c   :  { %2729 = vmatpush3.msra.mxu1 %v934_v43  ;;  %v937_v58 = vmax.f32 %v922_v50, 0.0  ;;  %v1767_v43 = vld [vmem:[%s3852_s5 + $0x148] sm:$0xff]  ;;  %v1770_v50 = vld [vmem:[%s3852_s5 + $0x160] sm:$0xff]  ;;  %v1736_v54 = vld [vmem:[%s3852_s5 + $0x50] sm:$0xff] }
 0x13d   :  { %2566 = vmatmul.mubr.msk.f32.vlgmr.msra.gmra.mrb[12].mxu0 %vm947_vm0, %v2562_v29  ;;  %2731 = vmatmul.mubr.msk.f32.vlgmr.msra.gmra.mrb[12].mxu1 %vm947_vm0, %v2563_v49  ;;  %v2865_v29 = vpack.c.bf16 %v1763_v23, %v1762_v21  ;;  %v2873_v45 = vpack.c.bf16 %v1767_v43, %v1766_v42  ;;  %v2847_v56 = vpack.c.bf16 %v1737_v55, %v1736_v54  ;;  %v1972_v21 = vld [vmem:[%s3854_s6] sm:$0xff] }
 0x13e   :  { %1407 = vmatprep.mubr.f32.mxu0 %v3118_v35  ;;  %2733 = vmatprep.mubr.msk.f32.mxu1 %vm947_vm0, %v2564_v33 }
 0x13f   :  { %1540 = vmatprep.subr.mxu0 %v936_v52  ;;  %2736 = vmatprep.subr.mxu1 %v937_v58  ;;  %v1773_v52 = vld [vmem:[%s3852_s5 + $0x178] sm:$0xff] }
 0x140   :  { %1541 = vmatpush1.msra.mxu0 %v935_v53  ;;  %2737 = vmatpush3.msra.mxu1 %v937_v58  ;;  %v2885_v53 = vpack.c.bf16 %v1773_v52, %v1772_v46  ;;  %v1755_v58 = vld [vmem:[%s3852_s5 + $0xe8] sm:$0xff] }
 0x141   :  { %2567 = vmatmul.mubr.msk.f32.gmra.mrb[14].mxu0 %vm947_vm0, %v2563_v49  ;;  %2734 = vmatmul.mubr.msk.f32.gmra.mrb[14].mxu1 %vm947_vm0, %v2565_v59  ;;  %v2877_v49 = vpack.c.bf16 %v1769_v48, %v1768_v47 }
 0x142   :  { %1413 = vmatprep.mubr.f32.mxu0 %v3118_v35  ;;  %2738 = vmatprep.mubr.msk.f32.mxu1 %vm947_vm0, %v2574_v60 }
 0x143   :  { %2858 = vmatprep.subr.bf16.mxu0 %v2857_v61  ;;  %2826 = vmatprep.subr.bf16.mxu1 %v2825_v62 }
 0x145   :  { %2568 = vmatmul.mubr.msk.f32.gmra.mrb[16].mxu0 %vm947_vm0, %v2564_v33  ;;  %2739 = vmatmul.mubr.msk.f32.vlgmr.msra.gmra.mrb[12].mxu1 %vm947_vm0, %v2575_v4  ;;  %v2881_v33 = vpack.c.bf16 %v1771_v51, %v1770_v50 }
 0x146   :  { %1419 = vmatprep.mubr.f32.mxu0 %v3118_v35  ;;  %2741 = vmatprep.mubr.msk.f32.mxu1 %vm947_vm0, %v3625_v5 }
 0x147   :  { %2828 = vmatpush3.bf16.msra.mxu1 %v2827_v6  ;;  %v1774_v6 = vld [vmem:[%s3853_s4] sm:$0xff] }
 0x148   :  { %2830 = vmatprep.subr.bf16.mxu1 %v2829_v7  ;;  %v1776_v7 = vld [vmem:[%s3853_s4 + $0x10] sm:$0xff]  ;;  %1780 = vperm.xlu0 %2957, %v1774_v6   ;;  %v2339_v6 = vld [vmem:[%s3857_s10] sm:$0x7] }
 0x149   :  { %2569 = vmatmul.mubr.msk.f32.gmra.mrb[18].mxu0 %vm947_vm0, %v2565_v59  ;;  %2742 = vmatmul.mubr.msk.f32.gmra.mrb[14].mxu1 %vm947_vm0, %v2577_v12  ;;  %v2849_v59 = vpack.c.bf16 %v1755_v58, %v1754_v57 }
 0x14a   :  { %1604 = vmatprep.mubr.f32.mxu0 %v3118_v35  ;;  %1790 = vperm.xlu1 %2958, %v1776_v7  }
 0x14b   :  { %2832 = vmatpush3.bf16.msra.mxu1 %v2831_v14 }
 0x14c   :  { %2834 = vmatprep.subr.bf16.mxu1 %v2833_v15  ;;  %1785 = vperm.xlu0 %2957, %v1775_v8  }
 0x14d   :  { %2578 = vmatmul.mubr.msk.f32.vlgmr.msra.gmra.mrb[12].mxu0 %vm947_vm0, %v2574_v60  ;;  %v1738_v60 = vld [vmem:[%s3852_s5 + $0x60] sm:$0xff] }
 0x14e   :  { %1610 = vmatprep.mubr.f32.mxu0 %v3118_v35  ;;  %2860 = vmatpush3.bf16.msra.mxu0 %v2857_v61  ;;  %v1739_v61 = vld [vmem:[%s3852_s5 + $0x68] sm:$0xff] }
 0x14f   :  { %2862 = vmatprep.subr.bf16.mxu0 %v2861_v20  ;;  %2836 = vmatpush3.bf16.msra.mxu1 %v2835_v22  ;;  %v2851_v62 = vpack.c.bf16 %v1739_v61, %v1738_v60  ;;  %v1973_v22 = vld [vmem:[%s3854_s6 + $0x8] sm:$0xff] }
 0x150   :  { %2838 = vmatprep.subr.bf16.mxu1 %v2837_v24  ;;  %1795 = vperm.xlu1 %2958, %v1777_v9   ;;  %v2889_v23 = vpack.c.bf16 %v1973_v22, %v1972_v21  ;;  %v1974_v24 = vld [vmem:[%s3854_s6 + $0x10] sm:$0x1f]  ;;  %s3119_s6 = smov 127   ;;  %v2078_v61 = vld [vmem:[%s3855_s8 + $0x8] sm:$0xff]  ;;  %v2595_v21 = vld [vmem:[%s3856_s7 + $0x20] sm:$0xff] }
 0x151   :  { %2579 = vmatmul.mubr.msk.f32.gmra.mrb[14].mxu0 %vm947_vm0, %v2575_v4  ;;  %v1741_v4 = vld [vmem:[%s3852_s5 + $0x78] sm:$0xff]  ;;  %v2596_v22 = vld [vmem:[%s3856_s7 + $0x28] sm:$0xff] }
 0x152   :  { %1616 = vmatprep.mubr.f32.mxu0 %v3118_v35  ;;  %2864 = vmatpush3.bf16.msra.mxu0 %v2861_v20 }
 0x153   :  { %2866 = vmatprep.subr.bf16.mxu0 %v2865_v29  ;;  %2840 = vmatpush3.bf16.msra.mxu1 %v2839_v31 }
 0x154   :  { %2842 = vmatprep.subr.bf16.mxu1 %v2841_v34 }
 0x155   :  { %2580 = vmatmul.mubr.msk.f32.gmra.mrb[16].mxu0 %vm947_vm0, %v3625_v5  ;;  %v2855_v5 = vpack.c.bf16 %v1741_v4, %v1740_v3  ;;  %v2077_v4 = vld [vmem:[%s3855_s8] sm:$0xff] }
 0x156   :  { %1622 = vmatprep.mubr.f32.mxu0 %v3118_v35  ;;  %2868 = vmatpush3.bf16.msra.mxu0 %v2865_v29 }
 0x157   :  { %2870 = vmatprep.subr.bf16.mxu0 %v2869_v40  ;;  %2844 = vmatpush3.bf16.msra.mxu1 %v2843_v41 }
 0x158   :  { %2846 = vmatprep.subr.bf16.mxu1 %v2845_v44 }
 0x159   :  { %2581 = vmatmul.mubr.msk.f32.gmra.mrb[18].mxu0 %vm947_vm0, %v2577_v12 }
 0x15a   :  { %2872 = vmatpush3.bf16.msra.mxu0 %v2869_v40 }
 0x15b   :  { %2874 = vmatprep.subr.bf16.mxu0 %v2873_v45  ;;  %2848 = vmatpush3.bf16.msra.mxu1 %v2847_v56 }
 0x15c   :  { %2850 = vmatprep.subr.bf16.mxu1 %v2849_v59 }
 0x15e   :  { %2876 = vmatpush3.bf16.msra.mxu0 %v2873_v45 }
 0x15f   :  { %2878 = vmatprep.subr.bf16.mxu0 %v2877_v49  ;;  %2852 = vmatpush3.bf16.msra.mxu1 %v2851_v62  ;;  %v2092_v62 = vld [vmem:[%s3856_s7] sm:$0xff] }
 0x160   :  { %2854 = vmatprep.subr.bf16.mxu1 %v2853_v2  ;;  %v2080_v2 = vld [vmem:[%s3855_s8 + $0x18] sm:$0xff] }
 0x162   :  { %2880 = vmatpush3.bf16.msra.mxu0 %v2877_v49 }
 0x163   :  { %2882 = vmatprep.subr.bf16.mxu0 %v2881_v33  ;;  %2856 = vmatpush3.bf16.msra.mxu1 %v2855_v5  ;;  %v2079_v5 = vld [vmem:[%s3855_s8 + $0x10] sm:$0xff] }
 0x164   :  { %2890 = vmatprep.subr.bf16.mxu1 %v2889_v23 }
 0x166   :  { %2884 = vmatpush3.bf16.msra.mxu0 %v2881_v33 }
 0x167   :  { %2886 = vmatprep.subr.bf16.mxu0 %v2885_v53 }
 0x16a   :  { %2888 = vmatpush3.bf16.msra.mxu0 %v2885_v53 }
 0x1c7   :  { %v1781_v29 = vpop.permute.xlu0 %1780 }
 0x1c9   :  { %v1791_v44 = vpop.permute.xlu1 %1790 }
 0x1cb   :  { %v1786_v38 = vpop.permute.xlu0 %1785 }
 0x1cf   :  { %v1796_v53 = vpop.permute.xlu1 %1795 }
 0x218   :  { %v2740_v10 = vpop.f32.mrb[12].mxu1 }
 0x219   :  { %v1695_v11 = vpop.f32.mrb[13].mxu1 }
 0x21a   :  { %2776 = vmatprep.mubr.f32.mxu0 %v1695_v11 }
 0x21b   :  { %2777 = vmatmul.mubr.f32.vlgmr.msra.gmra.mrb[20].mxu0 %v2740_v10 }
 0x21c   :  { %v2743_v12 = vpop.f32.mrb[14].mxu1 }
 0x21d   :  { %v1705_v13 = vpop.f32.mrb[15].mxu1 }
 0x21e   :  { %2779 = vmatprep.mubr.f32.mxu0 %v1705_v13 }
 0x21f   :  { %2780 = vmatmul.mubr.f32.gmra.mrb[22].mxu0 %v2743_v12 }
 0x220   :  { %v1606_v14 = vpop.f32.mrb[12].mxu0  ;;  %2822 = vmatprep.mubr.msk.f32.mxu0 %vm3122_vm5, %v3118_v35 }
 0x221   :  { %v1608_v1 = vpop.f32.mrb[13].mxu0 }
 0x222   :  { %1862 = vmatprep.mubr.f32.mxu1 %v1608_v1 }
 0x223   :  { %1863 = vmatmul.mubr.f32.vlgmr.msra.gmra.mrb[16].mxu1 %v1606_v14 }
 0x224   :  { %v1612_v15 = vpop.f32.mrb[14].mxu0  ;;  %2892 = vmatpush3.bf16.msra.mxu1 %v2889_v23  ;;  %v2597_v23 = vld [vmem:[%s3856_s7 + $0x30] sm:$0xff] }
 0x225   :  { %v1614_v16 = vpop.f32.mrb[15].mxu0  ;;  %2786 = vmatprep.subr.msk.mxu1 %vm1988_vm1, %v1974_v24 }
 0x226   :  { %1867 = vmatprep.mubr.f32.mxu1 %v1614_v16 }
 0x227   :  { %1868 = vmatmul.mubr.f32.gmra.mrb[18].mxu1 %v1612_v15 }
 0x228   :  { %v1618_v17 = vpop.f32.mrb[16].mxu0  ;;  %2787 = vmatpush3.msk.msra.mxu1 %vm1988_vm1, %v1974_v24  ;;  %v2598_v24 = vld [vmem:[%s3856_s7 + $0x38] sm:$0xff] }
 0x229   :  { %v1620_v18 = vpop.f32.mrb[17].mxu0 }
 0x22a   :  { %1872 = vmatprep.mubr.f32.mxu1 %v1620_v18  ;;  %v2093_v18 = vld [vmem:[%s3856_s7 + $0x8] sm:$0xff] }
 0x22b   :  { %1873 = vmatmul.mubr.f32.gmra.mrb[20].mxu1 %v1618_v17 }
 0x22c   :  { %v1624_v19 = vpop.f32.mrb[18].mxu0 }
 0x22d   :  { %v1626_v20 = vpop.f32.mrb[19].mxu0 }
 0x22e   :  { %1877 = vmatprep.mubr.f32.mxu1 %v1626_v20  ;;  %v2095_v20 = vld [vmem:[%s3856_s7 + $0x18] sm:$0xff] }
 0x22f   :  { %1878 = vmatmul.mubr.f32.gmra.mrb[22].mxu1 %v1624_v19  ;;  %v2094_v19 = vld [vmem:[%s3856_s7 + $0x10] sm:$0xff] }
 0x2ee   :  { %v2778_v25 = vpop.f32.mrb[20].mxu0 }
 0x2ef   :  { %v1949_v26 = vpop.f32.mrb[21].mxu0 }
 0x2f2   :  { %v2781_v27 = vpop.f32.mrb[22].mxu0 }
 0x2f3   :  { %v1959_v28 = vpop.f32.mrb[23].mxu0 }
 0x2f6   :  { %v2656_v30 = vpop.f32.mrb[16].mxu1 }
 0x2f7   :  { %v2657_v31 = vpop.f32.mrb[17].mxu1 }
 0x2f8   :  { %v2658_v32 = vadd.f32 %v2657_v31, %v2656_v30 }
 0x2fa   :  { %v1865_v34 = vadd.f32 %v2658_v32, %v1781_v29  ;;  %v2659_v36 = vpop.f32.mrb[18].mxu1 }
 0x2fb   :  { %v2660_v37 = vpop.f32.mrb[19].mxu1 }
 0x2fc   :  { %v1950_v39 = vadd.f32 %v1949_v26, %v1865_v34  ;;  %v2661_v40 = vadd.f32 %v2660_v37, %v2659_v36 }
 0x2fe   :  { %v1968_v41 = vmax.f32 %v1950_v39, 0.0  ;;  %v1870_v42 = vadd.f32 %v2661_v40, %v1786_v38  ;;  %v2662_v43 = vpop.f32.mrb[20].mxu1 }
 0x2ff   :  { %v2663_v45 = vpop.f32.mrb[21].mxu1 }
 0x300   :  { %v1955_v47 = vadd.f32 %v2778_v25, %v1870_v42  ;;  %v2664_v48 = vadd.f32 %v2663_v45, %v2662_v43  ;;  %2788 = vmatprep.mubr.msk.f32.mxu1 %vm1975_vm2, %v1968_v41  ;;  %v3121_v25 = vmov 0.0|0.0   ;;  %v2338_v45 = vld [vmem:[%s3858_s9] sm:$0x7] }
 0x301   :  { %2901 = vmatprep.subr.bf16.mxu0 %v3121_v25 }
 0x302   :  { %v1969_v49 = vmax.f32 %v1955_v47, 0.0  ;;  %v1875_v50 = vadd.f32 %v2664_v48, %v1791_v44  ;;  %v2665_v51 = vpop.f32.mrb[22].mxu1 }
 0x303   :  { %v2666_v33 = vpop.f32.mrb[23].mxu1 }
 0x304   :  { %v1960_v46 = vadd.f32 %v1959_v28, %v1875_v50  ;;  %v2667_v52 = vadd.f32 %v2666_v33, %v2665_v51  ;;  %2789 = vmatmul.mubr.msk.f32.vlgmr.msra.gmra.mrb[24].mxu1 %vm1975_vm2, %v1969_v49 }
 0x306   :  { %v1970_v54 = vmax.f32 %v1960_v46, 0.0  ;;  %v1880_v55 = vadd.f32 %v2667_v52, %v1796_v53 }
 0x308   :  { %v1965_v56 = vadd.f32 %v2781_v27, %v1880_v55  ;;  %2791 = vmatprep.mubr.msk.f32.mxu1 %vm1975_vm2, %v1970_v54 }
 0x30a   :  { %v1971_v57 = vmax.f32 %v1965_v56, 0.0 }
 0x30c   :  { %2792 = vmatmul.mubr.msk.f32.gmra.mrb[26].mxu1 %vm1975_vm2, %v1971_v57 }
 0x30d   :  { %2798 = vmatprep.mubr.msk.f32.mxu1 %vm2096_vm3, %v2092_v62 }
 0x3d7   :  { %v2790_v58 = vpop.f32.mrb[24].mxu1 }
 0x3d8   :  { %v2058_v59 = vpop.f32.mrb[25].mxu1 }
 0x3d9   :  { %v2964_v60 = vpack.i.bf16 %v2790_v58, %v2058_v59 }
 0x3db   :  { %2965 = vrot.lane.b32.xlu1 %v2964_v60, %s3119_s6 }
 0x3df   :  { %2201 = vperm.xlu1 %2958, %v2078_v61   ;;  %v2793_v63 = vpop.f32.mrb[26].mxu1 }
 0x3e0   :  { %v2068_v0 = vpop.f32.mrb[27].mxu1 }
 0x3e1   :  { %v2959_v3 = vpack.i.bf16 %v2793_v63, %v2068_v0 }
 0x3e3   :  { %2211 = vperm.xlu1 %2958, %v2080_v2   ;;  %2960 = vrot.lane.b32.xlu0 %v2959_v3, %s3120_s27 }
 0x3e7   :  { %2196 = vperm.xlu0 %2957, %v2077_v4  }
 0x3eb   :  { %2206 = vperm.xlu0 %2957, %v2079_v5  }
 0x3ef   :  { %2342 = vperm.xlu0 %2957, %v2339_v6  }
 0x44d   :  { %v2966_v7 = vpop.permute.xlu1 %2965 }
 0x44e   :  { %v2968_v8 = vunpack.i.h.bf16 %v2966_v7  ;;  %v2967_v9 = vunpack.i.l.bf16 %v2966_v7 }
 0x450   :  { %v2226_v10 = vsel %vm2089_vm4, %v2967_v9, %v2068_v0  ;;  %v2227_v11 = vsel %vm2089_vm4, %v2968_v8, %v2793_v63 }
 0x451   :  { %v2897_v12 = vpack.c.bf16 %v2227_v11, %v2226_v10 }
 0x455   :  { %v2961_v13 = vpop.permute.xlu0 %2960 }
 0x456   :  { %v2963_v14 = vunpack.i.h.bf16 %v2961_v13  ;;  %v2962_v1 = vunpack.i.l.bf16 %v2961_v13 }
 0x458   :  { %v2090_v15 = vsel %vm2089_vm4, %v2058_v59, %v2962_v1  ;;  %v2091_v16 = vsel %vm2089_vm4, %v2790_v58, %v2963_v14 }
 0x459   :  { %v2893_v17 = vpack.c.bf16 %v2091_v16, %v2090_v15 }
 0x45b   :  { %2894 = vmatprep.subr.bf16.mxu1 %v2893_v17 }
 0x45c   :  { %2896 = vmatpush3.bf16.msra.mxu1 %v2893_v17 }
 0x45d   :  { %2898 = vmatprep.subr.bf16.mxu1 %v2897_v12 }
 0x45e   :  { %v2202_v26 = vpop.permute.xlu1 %2201 }
 0x45f   :  { %2799 = vmatmul.mubr.msk.f32.vlgmr.msra.gmra.mrb[28].mxu1 %vm2096_vm3, %v2093_v18 }
 0x460   :  { %2900 = vmatpush3.bf16.msra.mxu1 %v2897_v12  ;;  %2801 = vmatprep.mubr.msk.f32.mxu1 %vm2096_vm3, %v2094_v19 }
 0x462   :  { %v2212_v34 = vpop.permute.xlu1 %2211 }
 0x463   :  { %2802 = vmatmul.mubr.msk.f32.gmra.mrb[30].mxu1 %vm2096_vm3, %v2095_v20 }
 0x464   :  { %2808 = vmatprep.mubr.msk.f32.mxu1 %vm2096_vm3, %v2595_v21 }
 0x466   :  { %v2197_v27 = vpop.permute.xlu0 %2196 }
 0x467   :  { %2809 = vmatmul.mubr.msk.f32.vlgmr.msra.gmra.mrb[28].mxu1 %vm2096_vm3, %v2596_v22 }
 0x468   :  { %2811 = vmatprep.mubr.msk.f32.mxu1 %vm2096_vm3, %v2597_v23 }
 0x46a   :  { %v2207_v38 = vpop.permute.xlu0 %2206 }
 0x46b   :  { %2812 = vmatmul.mubr.msk.f32.gmra.mrb[30].mxu1 %vm2096_vm3, %v2598_v24 }
 0x46e   :  { %v2343_v47 = vpop.permute.xlu0 %2342 }
 0x53a   :  { %v2810_v28 = vpop.f32.mrb[28].mxu1 }
 0x53b   :  { %v2907_v29 = vadd.f32 %v2810_v28, %v2202_v26  ;;  %v2311_v30 = vpop.f32.mrb[29].mxu1 }
 0x53c   :  { %v2908_v31 = vadd.f32 %v2311_v30, %v2197_v27 }
 0x53d   :  { %v2335_v32 = vmax.f32 %v2907_v29, 0.0 }
 0x53e   :  { %v2334_v36 = vmax.f32 %v2908_v31, 0.0  ;;  %v2813_v37 = vpop.f32.mrb[30].mxu1 }
 0x53f   :  { %v2909_v39 = vadd.f32 %v2813_v37, %v2212_v34  ;;  %v2321_v40 = vpop.f32.mrb[31].mxu1 }
 0x540   :  { %v2902_v41 = vpack.c.bf16 %v2335_v32, %v2334_v36  ;;  %v2910_v42 = vadd.f32 %v2321_v40, %v2207_v38 }
 0x541   :  { %v2337_v43 = vmax.f32 %v2909_v39, 0.0 }
 0x542   :  { %v2336_v44 = vmax.f32 %v2910_v42, 0.0  ;;  %2903 = vmatpush3.bf16.msra.mxu0 %v2902_v41 }
 0x543   :  { %2904 = vmatprep.subr.bf16.mxu0 %v3121_v25 }
 0x544   :  { %v2905_v35 = vpack.c.bf16 %v2337_v43, %v2336_v44 }
 0x546   :  { %2906 = vmatpush3.bf16.msra.mxu0 %v2905_v35 }
 0x549   :  { %2823 = vmatmul.mubr.msk.f32.vlgmr.msra.gmra.mrb[24].mxu0 %vm2345_vm6, %v2338_v45 }
 0x61c   :  { %v2415_v48 = vpop.f32.mrb[24].mxu0 }
 0x61d   :  { %v2416_v49 = vadd.f32 %v2415_v48, %v2343_v47  ;;  %v2824_v50 = vpop.f32.mrb[25].mxu0 }
 0x61f   :  { %v2420_v51 = vsel %vm2419_vm7, %v2416_v49, -inf }
 0x620   :  { %v2421_v33 = vrot.slane %v2420_v51, 4 }
 0x622   :  { %v2422_v46 = vmax.f32 %v2420_v51, %v2421_v33 }
 0x624   :  { %v2423_v52 = vrot.slane %v2422_v46, 2 }
 0x626   :  { %v2424_v53 = vmax.f32 %v2422_v46, %v2423_v52 }
 0x628   :  { %v2425_v54 = vrot.slane %v2424_v53, 1 }
 0x62a   :  { %v2426_v55 = vmax.f32 %v2424_v53, %v2425_v54 }
 0x62c   :  { %v2427_v56 = vsub.f32 %v2416_v49, %v2426_v55 }
 0x62e   :  { %v2428_v57 = vmul.f32 1.442695, %v2427_v56 }
 0x630   :  { %3113 = vpow2.f32 %v2428_v57 }
 0x63a   :  { %v3114_v58 = vpop.eup %3113 }
 0x63b   :  { %v2430_v59 = vsel %vm2419_vm7, %v3114_v58, 0.0 }
 0x63c   :  { %v2431_v60 = vrot.slane %v2430_v59, 4 }
 0x63e   :  { %v2432_v61 = vadd.f32 %v2431_v60, %v2430_v59 }
 0x640   :  { %v2433_v62 = vrot.slane %v2432_v61, 2 }
 0x642   :  { %v2434_v63 = vadd.f32 %v2433_v62, %v2432_v61 }
 0x644   :  { %v2435_v0 = vrot.slane %v2434_v63, 1 }
 0x646   :  { %v2436_v2 = vadd.f32 %v2435_v0, %v2434_v63 }
 0x648   :  { %3115 = vlog2.f32 %v2436_v2 }
 0x652   :  { %v3116_v3 = vpop.eup %3115 }
 0x653   :  { %v2438_v4 = vmul.f32 0.6931472, %v3116_v3 }
 0x655   :  { %v2439_v5 = vadd.f32 %v2438_v4, %v2426_v55 }
 0x657   :  { %v2440_v6 = vsub.f32 %v2416_v49, %v2439_v5 }
 0x659   :  { %2441 = vst.msk [vmem:[%s3859_s11] sm:$0x7] %vm2419_vm7, %v2440_v6 }

</bundles_post_ra>
